<compile_context>
chip_gen: v7x
topology: tpu7x:2x2x1
jax: 0.10.0
libtpu: 0.0.40
codegen_flags: <defaults>
</compile_context>

<pallas_src>
import functools

import jax
import jax.numpy as jnp
from jax.experimental import pallas as pl
from jax.experimental.pallas import tpu as pltpu


def _round_up(x, m):
    return ((x + m - 1) // m) * m


def _vmem_capacity_bytes():
    try:
        return int(pltpu.get_tpu_info().vmem_capacity_bytes)
    except Exception:
        return 64 << 20  # conservative (v7x-sized) fallback


def _choose_tiles(E, B, IN, OUT, xb, wb, ob, budget):
    """Pick (TM, TK, TN) under the double-buffered VMEM `budget` (bytes).

    Preference order for the weight-streaming-bound regime:
      1. TM = full batch (keep #M-tiles == 1; extra M tiles re-stream weights)
      2. TK = full IN   (single K step -> no accumulator, no K padding)
      3. TN as large as fits (long, lane-dense weight DMAs, few grid steps)
    """

    def cost(TM, TK, TN):
        c = 2 * (TM * TK * xb + TK * TN * wb + TM * TN * ob)  # double-buffered
        if TK < IN:
            c += TM * TN * 4  # f32 accumulator scratch
        return c

    def solve_tn(TM, TK):
        if cost(TM, TK, OUT) <= budget:
            return OUT
        avail = budget - 2 * TM * TK * xb
        if avail <= 0:
            return None
        denom = 2 * (TK * wb + TM * ob) + (TM * 4 if TK < IN else 0)
        tn = (avail // denom) // 128 * 128
        return int(tn) if tn >= 128 else None

    def solve_tk(TM):
        if IN <= 128 or solve_tn(TM, IN) is not None:
            return IN
        # K tiling needed: largest 128-multiple TK that still admits TN=128.
        avail = budget - 2 * TM * 128 * ob - TM * 128 * 4
        if avail <= 0:
            return None
        denom = 2 * (TM * xb + 128 * wb)
        tk = (avail // denom) // 128 * 128
        tk = min(int(tk), _round_up(IN, 128))
        return tk if tk >= 128 else None

    TM = B
    TK = solve_tk(TM)
    while TK is None and TM > 8:  # extreme fallback: batch too big for one tile
        TM = max(_round_up(TM // 2, 8), 8)
        TK = solve_tk(TM)
    if TK is None:  # last resort (absurdly small budget)
        TK = IN if IN <= 128 else 128
    TN = solve_tn(TM, TK)
    if TN is None:
        TN = OUT if OUT <= 128 else 128

    # v7x megacore balance: if the parallel iteration space is odd/degenerate,
    # split N in two (only when cheap: full-N tile and OUT is 2x128-aligned).
    m_tiles = -(-B // TM)
    n_tiles = -(-OUT // TN)
    if (E * m_tiles * n_tiles) % 2 == 1 and TN == OUT and OUT % 256 == 0:
        TN = OUT // 2

    return TM, TK, TN


def _kernel_single_k(x_ref, w_ref, *rest, compute_dtype, has_bias):
    # Fast path: one K step per output tile -> no accumulator scratch.
    if has_bias:
        b_ref, o_ref = rest
    else:
        (o_ref,) = rest
        b_ref = None
    x = x_ref[...]
    w = w_ref[...]
    if compute_dtype is not None:
        x = x.astype(compute_dtype)  # in-kernel cast: VPU op hidden under DMA/MXU
        w = w.astype(compute_dtype)
    acc = jnp.dot(x, w, preferred_element_type=jnp.float32)
    if b_ref is not None:
        acc = acc + b_ref[...].astype(jnp.float32)
    o_ref[...] = acc.astype(o_ref.dtype)


def _kernel_multi_k(x_ref, w_ref, *rest, compute_dtype, has_bias):
    # K-tiled fallback with resident f32 accumulator.
    if has_bias:
        b_ref, o_ref, acc_ref = rest
    else:
        o_ref, acc_ref = rest
        b_ref = None
    k = pl.program_id(3)

    @pl.when(k == 0)
    def _():
        acc_ref[...] = jnp.zeros_like(acc_ref)

    x = x_ref[...]
    w = w_ref[...]
    if compute_dtype is not None:
        x = x.astype(compute_dtype)
        w = w.astype(compute_dtype)
    acc_ref[...] += jnp.dot(x, w, preferred_element_type=jnp.float32)

    @pl.when(k == pl.num_programs(3) - 1)
    def _():
        acc = acc_ref[...]
        if b_ref is not None:
            acc = acc + b_ref[...].astype(jnp.float32)  # bias added once per tile
        o_ref[...] = acc.astype(o_ref.dtype)


def ensemble_linear(x, weight, bias=None, *, compute_dtype=None,
                    vmem_step_budget_bytes=None):
    """Pallas TPU implementation of EnsembleLinearLayer.forward.

    x:      (E, B, IN)
    weight: (E, IN, OUT)
    bias:   (E, 1, OUT) or None
    compute_dtype: optional MXU input dtype (e.g. jnp.bfloat16); cast happens
                   in-kernel on the VMEM tiles, accumulation stays f32.
    returns (E, B, OUT) in x.dtype
    """
    E, B, IN = x.shape
    E_w, IN_w, OUT = weight.shape
    assert E == E_w and IN == IN_w
    if bias is not None:
        assert bias.shape == (E, 1, OUT)

    out_dtype = x.dtype
    xi = jnp.dtype(x.dtype).itemsize
    wi = jnp.dtype(weight.dtype).itemsize
    oi = jnp.dtype(out_dtype).itemsize
    has_bias = bias is not None

    vmem_cap = _vmem_capacity_bytes()
    if vmem_step_budget_bytes is None:
        vmem_step_budget_bytes = int(vmem_cap * 0.6)

    # Sublane-align the batch dim (cheap: x is the small operand). Weights are
    # never padded on the common path (full-extent IN / OUT tiles).
    B8 = _round_up(B, 8)
    TM, TK, TN = _choose_tiles(E, B8, IN, OUT, xi, wi, oi, vmem_step_budget_bytes)

    Bp = B8 if TM == B8 else _round_up(B8, TM)
    INp = IN if TK == IN else _round_up(IN, TK)
    OUTp = OUT if TN == OUT else _round_up(OUT, TN)

    if (Bp, INp) != (B, IN):
        x = jnp.pad(x, ((0, 0), (0, Bp - B), (0, INp - IN)))
    if (INp, OUTp) != (IN, OUT):
        # Only reached for pathological IN/OUT (larger than one VMEM tile and
        # not 128-aligned). If this is hot, pad the static weights once upstream.
        weight = jnp.pad(weight, ((0, 0), (0, INp - IN), (0, OUTp - OUT)))
    if has_bias and OUTp != OUT:
        bias = jnp.pad(bias, ((0, 0), (0, 0), (0, OUTp - OUT)))

    m_tiles, n_tiles, k_tiles = Bp // TM, OUTp // TN, INp // TK
    multi_k = k_tiles > 1

    if multi_k:
        grid = (E, m_tiles, n_tiles, k_tiles)
        x_spec = pl.BlockSpec((pl.Squeezed(), TM, TK), lambda e, i, j, k: (e, i, k))
        w_spec = pl.BlockSpec((pl.Squeezed(), TK, TN), lambda e, i, j, k: (e, k, j))
        b_spec = pl.BlockSpec((pl.Squeezed(), 1, TN), lambda e, i, j, k: (e, 0, j))
        o_spec = pl.BlockSpec((pl.Squeezed(), TM, TN), lambda e, i, j, k: (e, i, j))
        scratch_shapes = [pltpu.VMEM((TM, TN), jnp.float32)]
        dims = ("parallel", "parallel", "parallel", "arbitrary")
        kernel = functools.partial(_kernel_multi_k,
                                   compute_dtype=compute_dtype, has_bias=has_bias)
    else:
        grid = (E, m_tiles, n_tiles)
        x_spec = pl.BlockSpec((pl.Squeezed(), TM, TK), lambda e, i, j: (e, i, 0))
        w_spec = pl.BlockSpec((pl.Squeezed(), TK, TN), lambda e, i, j: (e, 0, j))
        b_spec = pl.BlockSpec((pl.Squeezed(), 1, TN), lambda e, i, j: (e, 0, j))
        o_spec = pl.BlockSpec((pl.Squeezed(), TM, TN), lambda e, i, j: (e, i, j))
        scratch_shapes = []
        dims = ("parallel", "parallel", "parallel")
        kernel = functools.partial(_kernel_single_k,
                                   compute_dtype=compute_dtype, has_bias=has_bias)

    if has_bias:
        in_specs = [x_spec, w_spec, b_spec]
        operands = (x, weight, bias)
    else:
        in_specs = [x_spec, w_spec]
        operands = (x, weight)

    # Advisory cost estimate, counting re-reads: weight re-streamed per M tile,
    # x re-streamed per N tile.
    flops = 2 * E * Bp * INp * OUTp + (E * Bp * OUTp if has_bias else 0)
    bytes_accessed = (E * n_tiles * Bp * INp * xi
                      + E * m_tiles * INp * OUTp * wi
                      + E * Bp * OUTp * oi)
    if has_bias:
        bytes_accessed += E * m_tiles * OUTp * jnp.dtype(bias.dtype).itemsize
    cost = pl.CostEstimate(flops=int(flops), transcendentals=0,
                           bytes_accessed=int(bytes_accessed))

    # VMEM limit: the scoped default (16 MiB v5e / 32 MiB v6e/v7x) is below
    # what the chosen double-buffered tiles need; raise it, staying under the
    # physical capacity of the current generation (64 MiB on v7x).
    vmem_need = 2 * (TM * TK * xi + TK * TN * wi + TM * TN * oi)
    if multi_k:
        vmem_need += TM * TN * 4
    if has_bias:
        vmem_need += 2 * TN * jnp.dtype(bias.dtype).itemsize
    vmem_limit = int(min(max(vmem_need + (8 << 20), 32 << 20),
                         int(vmem_cap * 0.9)))

    out = pl.pallas_call(
        kernel,
        out_shape=jax.ShapeDtypeStruct((E, Bp, OUTp), out_dtype),
        grid_spec=pltpu.PrefetchScalarGridSpec(
            num_scalar_prefetch=0,
            grid=grid,
            in_specs=in_specs,
            out_specs=o_spec,
            scratch_shapes=scratch_shapes,
        ),
        compiler_params=pltpu.CompilerParams(
            dimension_semantics=dims,
            vmem_limit_bytes=vmem_limit),
        cost_estimate=cost,
    )(*operands)

    if (Bp, OUTp) != (B, OUT):
        out = out[:, :B, :OUT]
    return out


if __name__ == "__main__":
    key = jax.random.PRNGKey(0)
    ks = jax.random.split(key, 12)
    HI = jax.lax.Precision.HIGHEST

    # Case 1: module-consistent small shapes -> full-extent tiles, zero
    # padding, single grid step per member, fast-path (no accumulator) kernel.
    E, B, IN, OUT = 4, 8, 32, 32
    x = jax.random.uniform(ks[0], (E, B, IN), dtype=jnp.float32)
    w = jax.random.uniform(ks[1], (E, IN, OUT), dtype=jnp.float32)
    b = jax.random.uniform(ks[2], (E, 1, OUT), dtype=jnp.float32)
    out = jax.block_until_ready(ensemble_linear(x, w, b))
    ref = jnp.matmul(x, w, precision=HI) + b
    assert out.shape == (E, B, OUT)
    assert jnp.allclose(out, ref, atol=1e-5, rtol=1e-5), "case1 mismatch"

    # Case 2: tiny VMEM budget forces N tiling + K tiling (f32 accumulator path).
    E2, B2, IN2, OUT2 = 2, 16, 512, 1024
    x2 = jax.random.uniform(ks[3], (E2, B2, IN2), dtype=jnp.float32)
    w2 = jax.random.uniform(ks[4], (E2, IN2, OUT2), dtype=jnp.float32)
    b2 = jax.random.uniform(ks[5], (E2, 1, OUT2), dtype=jnp.float32)
    out2 = jax.block_until_ready(
        ensemble_linear(x2, w2, b2, vmem_step_budget_bytes=200_000))
    ref2 = jnp.matmul(x2, w2, precision=HI) + b2
    assert jnp.allclose(out2, ref2, atol=1e-3, rtol=1e-4), "case2 mismatch"

    # Case 3: non-tile-aligned dims, no bias -> full-extent ragged IN/OUT tiles
    # (no weight padding); only the batch dim is sublane-padded.
    E3, B3, IN3, OUT3 = 3, 10, 200, 96
    x3 = jax.random.uniform(ks[6], (E3, B3, IN3), dtype=jnp.float32)
    w3 = jax.random.uniform(ks[7], (E3, IN3, OUT3), dtype=jnp.float32)
    out3 = jax.block_until_ready(ensemble_linear(x3, w3, None))
    ref3 = jnp.matmul(x3, w3, precision=HI)
    assert out3.shape == (E3, B3, OUT3)
    assert jnp.allclose(out3, ref3, atol=1e-4, rtol=1e-4), "case3 mismatch"

    # Case 4: budget forces N tiling with a single K step (fast path, TN < OUT).
    E4, B4, IN4, OUT4 = 2, 8, 256, 512
    x4 = jax.random.uniform(ks[8], (E4, B4, IN4), dtype=jnp.float32)
    w4 = jax.random.uniform(ks[9], (E4, IN4, OUT4), dtype=jnp.float32)
    b4 = jax.random.uniform(ks[10], (E4, 1, OUT4), dtype=jnp.float32)
    out4 = jax.block_until_ready(
        ensemble_linear(x4, w4, b4, vmem_step_budget_bytes=700_000))
    ref4 = jnp.matmul(x4, w4, precision=HI) + b4
    assert jnp.allclose(out4, ref4, atol=1e-3, rtol=1e-4), "case4 mismatch"

    # Case 5: in-kernel bf16 compute (f32 accumulation) — loose tolerance.
    out_bf = jax.block_until_ready(
        ensemble_linear(x, w, b, compute_dtype=jnp.bfloat16))
    assert jnp.allclose(out_bf, ref, atol=1e-1, rtol=5e-2), "case5 mismatch"

    print("KERNEL_OK")
</pallas_src>

<mosaic_0001>
module attributes {stable_mosaic.version = 11 : i64} {
  func.func @_kernel_single_k(%arg0: i32, %arg1: i32, %arg2: i32, %arg3: memref<1x8x32xf32, #tpu.memory_space<vmem>>, %arg4: memref<1x32x32xf32, #tpu.memory_space<vmem>>, %arg5: memref<1x1x32xf32, #tpu.memory_space<vmem>>, %arg6: memref<1x8x32xf32, #tpu.memory_space<vmem>>) attributes {dimension_semantics = [#tpu.dimension_semantics<parallel>, #tpu.dimension_semantics<parallel>, #tpu.dimension_semantics<parallel>], iteration_bounds = array<i64: 4, 1, 1>, scalar_prefetch = 0 : i64, scratch_operands = 0 : i64, tpu.core_type = #tpu.core_type<tc>, window_params = [{transform_indices = @transform_0, window_bounds = array<i64: 1, 8, 32>}, {transform_indices = @transform_1, window_bounds = array<i64: 1, 32, 32>}, {transform_indices = @transform_2, window_bounds = array<i64: 1, 1, 32>}, {transform_indices = @transform_3, window_bounds = array<i64: 1, 8, 32>}]} {
    %c0 = arith.constant 0 : index
    %c0_0 = arith.constant 0 : index
    %c0_1 = arith.constant 0 : index
    %0 = vector.load %arg3[%c0, %c0_0, %c0_1] : memref<1x8x32xf32, #tpu.memory_space<vmem>>, vector<1x8x32xf32>
    %1 = vector.shape_cast %0 : vector<1x8x32xf32> to vector<8x32xf32>
    %c0_2 = arith.constant 0 : index
    %c0_3 = arith.constant 0 : index
    %c0_4 = arith.constant 0 : index
    %2 = vector.load %arg4[%c0_2, %c0_3, %c0_4] : memref<1x32x32xf32, #tpu.memory_space<vmem>>, vector<1x32x32xf32>
    %3 = vector.shape_cast %2 : vector<1x32x32xf32> to vector<32x32xf32>
    %cst = arith.constant dense<0.000000e+00> : vector<8x32xf32>
    %4 = tpu.matmul %1, %3, %cst {dimension_numbers = #tpu.dot_dimension_numbers<[1], [0], [0], [1], [0, 0, 1, 1], [], []>} : vector<8x32xf32>, vector<32x32xf32>, vector<8x32xf32> -> vector<8x32xf32>
    %c0_5 = arith.constant 0 : index
    %c0_6 = arith.constant 0 : index
    %c0_7 = arith.constant 0 : index
    %5 = vector.load %arg5[%c0_5, %c0_6, %c0_7] : memref<1x1x32xf32, #tpu.memory_space<vmem>>, vector<1x1x32xf32>
    %6 = vector.shape_cast %5 : vector<1x1x32xf32> to vector<1x32xf32>
    %7 = vector.broadcast %6 : vector<1x32xf32> to vector<8x32xf32>
    %8 = arith.addf %4, %7 : vector<8x32xf32>
    %c0_8 = arith.constant 0 : index
    %c0_9 = arith.constant 0 : index
    %c0_10 = arith.constant 0 : index
    %9 = vector.load %arg6[%c0_8, %c0_9, %c0_10] : memref<1x8x32xf32, #tpu.memory_space<vmem>>, vector<1x8x32xf32>
    %10 = vector.shape_cast %9 : vector<1x8x32xf32> to vector<8x32xf32>
    %11 = vector.shape_cast %8 : vector<8x32xf32> to vector<1x8x32xf32>
    tpu.vector_store %arg6[%c0_8, %c0_9, %c0_10], %11 {strides = array<i32>} : memref<1x8x32xf32, #tpu.memory_space<vmem>>, vector<1x8x32xf32>,
    return
  }
  func.func @transform_0(%arg0: i32, %arg1: i32, %arg2: i32) -> (i32, i32, i32) {
    %c0_i32 = arith.constant 0 : i32
    %c0_i32_0 = arith.constant 0 : i32
    return %arg0, %arg1, %c0_i32 : i32, i32, i32
  }
  func.func @transform_1(%arg0: i32, %arg1: i32, %arg2: i32) -> (i32, i32, i32) {
    %c0_i32 = arith.constant 0 : i32
    %c0_i32_0 = arith.constant 0 : i32
    return %arg0, %c0_i32, %arg2 : i32, i32, i32
  }
  func.func @transform_2(%arg0: i32, %arg1: i32, %arg2: i32) -> (i32, i32, i32) {
    %c0_i32 = arith.constant 0 : i32
    %c0_i32_0 = arith.constant 0 : i32
    return %arg0, %c0_i32, %arg2 : i32, i32, i32
  }
  func.func @transform_3(%arg0: i32, %arg1: i32, %arg2: i32) -> (i32, i32, i32) {
    %c0_i32 = arith.constant 0 : i32
    return %arg0, %arg1, %arg2 : i32, i32, i32
  }
}

</mosaic_0001>

<bundles_post_ra>
// kernel: tpu_custom_call.1
= control target key start
LH: loop header
LB: loop body
LE: loop exit
PB: predicated region body
PF: predicated region fallthrough
CT: control target
= control target key end

     0   :  { %8 = vsyncpa [#allocation3], 0  ;;  %s1024_s0 = inlined_call_operand.hbm [shape: f32[4,8,32], index: 0, kind: input, shape index: {}]   ;;  %s1025_s1 = inlined_call_operand.hbm [shape: f32[4,32,32], index: 1, kind: input, shape index: {}]   ;;  %s1026_s2 = inlined_call_operand.vmem [shape: f32[4,1,32], index: 2, kind: input, shape index: {}]   ;;  %s1027_s3 = inlined_call_operand.hbm [shape: f32[4,8,32], index: 3, kind: output, shape index: {}]  }
   0x1   :  { %10 = vsyncpa [#allocation3 + $0x1], 0 }
   0x2   :  { %11 = vsyncpa [#allocation6], 0 }
   0x3   :  { %13 = vsyncpa [#allocation6 + $0x1], 0 }
   0x4   :  { %14 = vsyncpa [#allocation4], 0 }
   0x5   :  { %16 = vsyncpa [#allocation4 + $0x1], 0  ;;  %s794_s12 = smov 0   ;;  %s796_s13 = smov 0  }
   0x6   :  { %s798_s14 = smov 0   ;;  %s800_s15 = smov 0  }
   0x7   :  { %s802_s16 = smov 0   ;;  %s804_s17 = smov 0  }
   0x8 LB: > { %s504_s18 = sadd.s32 4294967295, %s764_s17   ;;  %s505_s19 = sadd.s32 4294967294, %s764_s17   ;;  %s764_s17 = sphi %s804_s17, %s22_s17   ;;  %s760_s16 = sphi %s802_s16, %s1045_s16   ;;  %s756_s15 = sphi %s800_s15, %s1044_s15   ;;  %s752_s14 = sphi %s798_s14, %s1043_s14   ;;  %s748_s13 = sphi %s796_s13, %s1042_s13   ;;  %s744_s12 = sphi %s794_s12, %s1041_s12  }
   0x9   : > { %s41_s20 = sadd.s32 1, %s760_s16  ;;  %s50_s21 = sadd.s32 1, %s752_s14 }
   0xa   : > { %p43_p0 = scmp.ge.s32.totalorder %s41_s20, 4  ;;  %p57_p1 = scmp.ne.s32.totalorder %s752_s14, %s748_s13 }
   0xb   : > { %p58_p2 = scmp.eq.s32.totalorder %s764_s17, 0  ;;  %p63_p3 = scmp.ne.s32.totalorder %s748_s13, %s744_s12 }
   0xc   : > { %s1047_s20 = smov (%p43_p0, %s41_s20), 0  ;;  %p64_p5 = scmp.eq.s32.totalorder %s504_s18, 0 }
   0xd   : > { %p835_p4 = por %p58_p2, %p57_p1  ;;  %s45_s23 = ssub.s32 %s760_s16, %s1047_s20 }
   0xe   : > { %p147_p6 = scmp.eq.s32.totalorder %s504_s18, 3  ;;  %p48_p7 = scmp.eq.s32.totalorder %s45_s23, 0 }
   0xf   : > { %p841_p8 = por %p64_p5, %p63_p3  ;;  %p153_p10 = scmp.eq.s32.totalorder %s505_s19, 3 }
  0x10   : > { %p845_p9 = por %p147_p6, %p57_p1  ;;  %p563_p12 = scmp.lt.s32.totalorder %s764_s17, 4 }
  0x11   : > { %s1031_s24 = scalar_select %p841_p8, 1, 0 }
  0x12   : > { %s1032_s25 = scalar_select %p845_p9, 1, 0 }
  0x13   : > { %s850_s26 = scalar_select %p48_p7, %s752_s14, %s50_s21  }
  0x14   : > { %p852_p11 = por %p153_p10, %p63_p3  ;;  %s858_s28 = sand.u32 1, %s752_s14  }
  0x15   : > { %s508_s29 = sshll.u32 %s858_s28, 3  ;;  %s509_s30 = sshll.u32 %s760_s16, 7 }
  0x16   : > { %s1033_s27 = scalar_select %p852_p11, 1, 0 }
  0x17   : > { %s865_s6 = scalar_lea.hbm %s1024_s0, %s509_s30  ;;  %s177_s7 = scalar_lea.vmem [#allocation2], %s508_s29 }
  0x18   : > { %s185_s8 = sshll.u32 %s177_s7, 4  ;;  %p871_p13 = pnand %p563_p12, %p835_p4  ;;  %s867_s8 = int_to_ptr.vmem [resolvable:$true] %s185_s8 }
  0x19   : > { %s174_s10 = scalar_lea.sflag [#allocation3], %s858_s28  ;;  %s618_s11 = scalar_lea.hbm %s865_s6, 128 }
  0x1a   : > { %p619_p2 = scmp.ne.s32.totalorder %s865_s6, %s618_s11  ;;  %p620_p3 = pneg %p871_p13 }
  0x1b   : > { %s623_s21 = scalar_lea.hbm %s1024_s0, 512  ;;  %p624_p4 = scmp.lt.u32.totalorder %s865_s6, %s1024_s0 }
  0x1c   : > { %p621_p5 = pnand %p620_p3, %p619_p2  ;;  %p625_p7 = scmp.lt.u32.totalorder %s623_s21, %s618_s11 }
  0x1d   : > { %p627_p12 = scmp.lt.u32.totalorder %s618_s11, %s865_s6 }
  0x1e   : > { %p622_p6 = pneg %p621_p5  ;;  %p626_p10 = por %p625_p7, %p624_p4 }
  0x20   : > { %p628_p0 = por %p627_p12, %p626_p10 }
  0x22   : > { %p629_p1 = pnand %p628_p0, %p622_p6 }
  0x24   : > { %632 = shalt.err (!%p629_p1)
}
  0x25   : > { %s633_s29 = scalar_lea.vmem %s867_s8, 128  ;;  %s766_s30 = smov [#allocation2]  }
  0x26   : > { %p634_p2 = scmp.ne.s32.totalorder %s867_s8, %s633_s29  ;;  %s638_s4 = sshll.u32 %s766_s30, 4  ;;  %s639_s4 = int_to_ptr.vmem [resolvable:$false] %s638_s4 }
  0x27   : > { %s640_s5 = scalar_lea.vmem %s639_s4, 256  ;;  %p641_p9 = scmp.lt.s32.totalorder %s867_s8, %s639_s4 }
  0x28   : > { %p636_p5 = pnand %p634_p2, %p620_p3  ;;  %p642_p4 = scmp.lt.s32.totalorder %s640_s5, %s633_s29 }
  0x2a   : > { %p637_p11 = pneg %p636_p5  ;;  %p643_p7 = por %p642_p4, %p641_p9 }
  0x2c   : > { %p644_p10 = pnand %p643_p7, %p637_p11 }
  0x2e   : > { %647 = shalt.err (!%p644_p10)
}
  0x2f   : > { %555 = dma.hbm_to_vmem [thread:$0]  (!%p871_p13), %s865_s6, 128, %s867_s8, %s174_s10  }
  0x30   : > { %p1035_p0 = scmp.lt.s32.totalorder %s764_s17, 5  ;;  %p1036_p1 = scmp.ge.s32.totalorder %s764_s17, 1 }
  0x31   : > { %s510_s11 = sshll.u32 %s858_s28, 5  ;;  %s523_s18 = sshll.u32 %s760_s16, 9 }
  0x32   : > { %p907_p6 = pnand %p1036_p1, %p1035_p0  ;;  %s916_s22 = scalar_lea.hbm %s1025_s1, %s523_s18 }
  0x33   : > { %s196_s23 = scalar_lea.vmem [#allocation5], %s510_s11  ;;  %s193_s6 = scalar_lea.sflag [#allocation6], %s858_s28 }
  0x34   : > { %s204_s29 = sshll.u32 %s196_s23, 4  ;;  %s648_s8 = scalar_lea.hbm %s916_s22, 512  ;;  %s918_s29 = int_to_ptr.vmem [resolvable:$true] %s204_s29 }
  0x35   : > { %p649_p9 = scmp.ne.s32.totalorder %s916_s22, %s648_s8  ;;  %s653_s4 = scalar_lea.hbm %s1025_s1, 2048 }
  0x36   : > { %p654_p2 = scmp.lt.u32.totalorder %s916_s22, %s1025_s1  ;;  %p655_p5 = scmp.lt.u32.totalorder %s653_s4, %s648_s8 }
  0x37   : > { %p651_p11 = pnand %p649_p9, %p620_p3  ;;  %p657_p7 = scmp.lt.u32.totalorder %s648_s8, %s916_s22 }
  0x38   : > { %p656_p4 = por %p655_p5, %p654_p2 }
  0x39   : > { %p652_p12 = pneg %p651_p11 }
  0x3a   : > { %p658_p10 = por %p657_p7, %p656_p4 }
  0x3c   : > { %p659_p0 = pnand %p658_p10, %p652_p12 }
  0x3e   : > { %662 = shalt.err (!%p659_p0)
}
  0x3f   : > { %s663_s11 = scalar_lea.vmem %s918_s29, 512  ;;  %s767_s19 = smov [#allocation5]  }
  0x40   : > { %p664_p1 = scmp.ne.s32.totalorder %s918_s29, %s663_s11  ;;  %s668_s21 = sshll.u32 %s767_s19, 4  ;;  %s669_s21 = int_to_ptr.vmem [resolvable:$false] %s668_s21 }
  0x41   : > { %s670_s23 = scalar_lea.vmem %s669_s21, 1024  ;;  %p671_p8 = scmp.lt.s32.totalorder %s918_s29, %s669_s21 }
  0x42   : > { %p666_p9 = pnand %p664_p1, %p620_p3  ;;  %p672_p2 = scmp.lt.s32.totalorder %s670_s23, %s663_s11 }
  0x44   : > { %p667_p11 = pneg %p666_p9  ;;  %p673_p5 = por %p672_p2, %p671_p8 }
  0x46   : > { %p674_p4 = pnand %p673_p5, %p667_p11 }
  0x48   : > { %677 = shalt.err (!%p674_p4)
}
  0x49   : > { %s768_s8 = smov 128   ;;  %s769_s10 = smov 8  }
  0x4a   : > { %558 = dma.hbm_to_vmem [thread:$0]  (!%p871_p13), %s916_s22, 512, %s918_s29, %s193_s6, %s768_s8, %s768_s8, %s769_s10  }
  0x4b   : > { %225 = sbr.rel (%p907_p6) target bundleno = 324 (0x144), region = 32  ;;  %s949_s30 = sand.u32 (!%p907_p6), 1, %s748_s13  }
  0x4c   : > { %s514_s4 = sshll.u32 (!%p907_p6), %s949_s30, 3  ;;  %s228_s5 = scalar_lea.sflag (!%p907_p6), [#allocation3], %s949_s30 }
  0x4d   : > { %s231_s18 = scalar_lea.vmem (!%p907_p6), [#allocation2], %s514_s4  ;;  %p1038_p8 = scmp.ne.s32.totalorder (!%p907_p6), %s1031_s24, 0 }
  0x52   : > { %731 = dma.done.wait (%p1038_p8), %s228_s5, 128  }
  0x53   : > { %733 = vsyncadd (%p1038_p8), %s228_s5, 4294967168  ;;  %s515_s28 = sshll.u32 %s949_s30, 5  ;;  %s237_s9 = scalar_lea.sflag [#allocation6], %s949_s30 }
  0x54   : > { %s240_s7 = scalar_lea.vmem [#allocation5], %s515_s28 }
  0x55   : > { %735 = dma.done.wait (%p1038_p8), %s237_s9, 512  }
  0x56   : > { %737 = vsyncadd (%p1038_p8), %s237_s9, 4294966784  ;;  %v770_v0 = vmov 0.0|0.0   ;;  %vm771_vm0 = vmmov 0   ;;  %v772_v1 = vmov 0.0   ;;  %v281_v2 = vld [vmem:[%s240_s7] sm:$0xff]  ;;  %v282_v3 = vld [vmem:[%s240_s7 + $0x8] sm:$0xff] }
  0x57   : > { %540 = vmatprep.subr.bf16.mxu0 %v770_v0  ;;  %537 = vmatprep.mubr.msk.f32.mxu0 %vm771_vm0, %v772_v1  ;;  %v283_v4 = vld [vmem:[%s240_s7 + $0x10] sm:$0xff]  ;;  %v541_v5 = vpack.c.bf16 %v282_v3, %v281_v2  ;;  %v284_v6 = vld [vmem:[%s240_s7 + $0x18] sm:$0xff]  ;;  %vm292_vm1 = vcmask 261120   ;;  %p274_p13 = scmp.lt.s32.totalorder %s756_s15, 3  ;;  %s520_s11 = sshll.u32 %s756_s15, 7 }
  0x58   : > { %v544_v7 = vpack.c.bf16 %v284_v6, %v283_v4  ;;  %v280_v8 = vld [vmem:[%s231_s18] sm:$0xff]  ;;  %s273_s19 = scalar_lea.vmem [#allocation7], %s514_s4  ;;  %s976_s10 = scalar_lea.hbm %s1027_s3, %s520_s11 }
  0x59   : > { %542 = vmatpush3.bf16.msra.mxu0 %v541_v5  ;;  %s275_s24 = scalar_select %p274_p13, %s756_s15, 3 }
  0x5a   : > { %543 = vmatprep.subr.bf16.mxu0 %v770_v0  ;;  %s383_s21 = sshll.u32 %s273_s19, 4  ;;  %s368_s5 = scalar_lea.sflag [#allocation4], %s949_s30  ;;  %s978_s21 = int_to_ptr.vmem [resolvable:$true] %s383_s21 }
  0x5b   : > { %s279_s6 = scalar_lea.vmem %s1026_s2, %s275_s24  ;;  %s678_s18 = scalar_lea.vmem %s978_s21, 128 }
  0x5c   : > { %v517_v9 = vld [vmem:[%s279_s6] ss:$0 sm:$0xff]  ;;  %p679_p3 = scmp.ne.s32.totalorder %s978_s21, %s678_s18  ;;  %p1039_p6 = scmp.ne.s32.totalorder %s1032_s25, 0 }
  0x5d   : > { %545 = vmatpush3.bf16.msra.mxu0 %v544_v7  ;;  %s773_s15 = smov [#allocation7]  }
  0x5e   : > { %p680_p12 = pnand %p679_p3, %p1039_p6  ;;  %s682_s4 = sshll.u32 %s773_s15, 4  ;;  %s683_s4 = int_to_ptr.vmem [resolvable:$false] %s682_s4 }
  0x5f   : > { %s684_s28 = scalar_lea.vmem %s683_s4, 256  ;;  %p685_p10 = scmp.lt.s32.totalorder %s978_s21, %s683_s4 }
  0x60   : > { %538 = vmatmul.mubr.msk.f32.vlgmr.msra.gmra.mrb[0].mxu0 %vm292_vm1, %v280_v8  ;;  %p681_p7 = pneg %p680_p12  ;;  %p686_p0 = scmp.lt.s32.totalorder %s684_s28, %s678_s18 }
  0x62   : > { %p687_p1 = por %p686_p0, %p685_p10 }
  0x64   : > { %p688_p9 = pnand %p687_p1, %p681_p7 }
 0x133   : > { %v362_v10 = vpop.f32.mrb[0].mxu0 }
 0x134   : > { %v363_v11 = vadd.f32 %v517_v9, %v362_v10  ;;  %v539_v12 = vpop.f32.mrb[1].mxu0 }
 0x136   : > { %366 = vst.msk [vmem:[%s273_s19] sm:$0xff] %vm292_vm1, %v363_v11 }
 0x137   : > { %691 = shalt.err (!%p688_p9)
}
 0x138   : > { %s692_s30 = scalar_lea.hbm %s976_s10, 128  ;;  %s696_s24 = scalar_lea.hbm %s1027_s3, 512 }
 0x139   : > { %p693_p11 = scmp.ne.s32.totalorder %s976_s10, %s692_s30  ;;  %p697_p4 = scmp.lt.u32.totalorder %s976_s10, %s1027_s3 }
 0x13a   : > { %p698_p8 = scmp.lt.u32.totalorder %s696_s24, %s692_s30  ;;  %p700_p3 = scmp.lt.u32.totalorder %s692_s30, %s976_s10 }
 0x13b   : > { %p694_p2 = pnand %p693_p11, %p1039_p6 }
 0x13c   : > { %p699_p13 = por %p698_p8, %p697_p4 }
 0x13d   : > { %p695_p5 = pneg %p694_p2 }
 0x13e   : > { %p701_p12 = por %p700_p3, %p699_p13 }
 0x140   : > { %p702_p7 = pnand %p701_p12, %p695_p5 }
 0x142   : > { %705 = shalt.err (!%p702_p7)
}
 0x143   : > { %550 = dma.vmem_to_hbm [thread:$0]  (%p1039_p6), %s978_s21, 128, %s976_s10, %s368_s5  }
 0x144 PF: > { %p564_p10 = scmp.ge.s32.totalorder %s764_s17, 2  ;;  %s395_s6 = sand.u32 1, %s744_s12  }
 0x145   : > { %p1040_p0 = scmp.ne.s32.totalorder %s1033_s27, 0  ;;  %s396_s11 = scalar_lea.sflag [#allocation4], %s395_s6 }
 0x147   : > { %p560_p1 = pnand %p564_p10, %p1040_p0 }
 0x149   : > { %739 = dma.done.wait (!%p560_p1), %s396_s11, 128  }
 0x14a   : > { %741 = vsyncadd (!%p560_p1), %s396_s11, 4294967168  ;;  %s22_s17 = sadd.s32 1, %s764_s17   ;;  %s1041_s12 = smov %s748_s13 }
 0x14b   : > { %p19_p9 = scmp.ge.s32.totalorder %s22_s17, 6   ;;  %s1042_s13 = smov %s752_s14 }
 0x14c   : > { %s1043_s14 = smov %s850_s26  ;;  %s1044_s15 = smov %s760_s16 }
 0x14d   : > { %s1045_s16 = smov %s1047_s20  ;;  %21 = sbr.rel (!%p19_p9) target bundleno = 8 (0x8), region = 93 }
 0x154   :  { %401 = vsyncpa [#allocation3], 1 }
 0x155   :  { %403 = vsyncpa [#allocation3 + $0x1], 1 }
 0x156   :  { %404 = vsyncpa [#allocation6], 1 }
 0x157   :  { %406 = vsyncpa [#allocation6 + $0x1], 1 }
 0x158   :  { %407 = vsyncpa [#allocation4], 1 }
 0x159   :  { %409 = vsyncpa [#allocation4 + $0x1], 1 }

</bundles_post_ra>
